<compile_context>
chip_gen: v6e
topology: v6e:2x2x1
jax: 0.10.0
libtpu: 0.0.40
codegen_flags: <defaults>
</compile_context>

<pallas_src>
import functools
import math

import jax
import jax.numpy as jnp
from jax.experimental import pallas as pl
from jax.experimental.pallas import tpu as pltpu


# ----------------------------- in-kernel math ------------------------------

def _erf(x):
  # Abramowitz & Stegun 7.1.26 rational approximation. exp and the reciprocal
  # run on the EUP, so the VALU cost is just the polynomial.
  a1, a2, a3, a4, a5 = (0.254829592, -0.284496736, 1.421413741,
                        -1.453152027, 1.061405429)
  p = 0.3275911
  ax = jnp.abs(x)
  t = pl.reciprocal(1.0 + p * ax, approx=True)
  poly = ((((a5 * t + a4) * t + a3) * t + a2) * t + a1) * t
  y = 1.0 - poly * jnp.exp(-ax * ax)
  return jnp.where(x >= 0, y, -y)


def _gelu_exact(x):
  # torch.nn.GELU() default = exact erf-based GELU.
  return 0.5 * x * (1.0 + _erf(x * (1.0 / math.sqrt(2.0))))


def _layernorm(x, gamma, beta, inv_n, eps=1e-5):
  # One-pass LN (E[x^2] - mean^2). Padded lanes of x are exact zeros (all
  # parameters are zero-padded), so plain lane sums equal sums over the true
  # width; only inv_n carries the true width. gamma/beta are zero-padded so
  # padded output lanes stay exactly 0.
  s1 = jnp.sum(x, axis=-1, keepdims=True)
  s2 = jnp.sum(x * x, axis=-1, keepdims=True)
  mean = s1 * inv_n
  var = jnp.maximum(s2 * inv_n - mean * mean, 0.0)
  return (x - mean) * jax.lax.rsqrt(var + eps) * gamma + beta


# ------------------------------- the kernel --------------------------------

def mlp_mixer_kernel(width, wp, ip, resident,
                     x_ref, w_in_ref, b_in_ref,
                     pp_ref, wff1_ref, wff2_ref,
                     lnf_g_ref, lnf_b_ref, w_out_ref, b_out_ref,
                     o_ref, h_ref):
  """grid = (row_block, layer). One mixer block per grid step along axis 1."""
  layer = pl.program_id(1)
  # resident=True: full (L, ...) weight slabs live in VMEM, index by layer.
  # resident=False: one layer's weights are streamed per grid step (block 0).
  li = layer if resident else 0
  inv_w = 1.0 / float(width)

  # Input projection only on the first layer step (x already bf16).
  @pl.when(layer == 0)
  def _():
    h_ref[...] = (jnp.dot(x_ref[...], w_in_ref[...],
                          preferred_element_type=jnp.float32) + b_in_ref[...])

  # Per-layer small params packed into one (8, Cp) slab: 1 DMA per layer step.
  pp = pp_ref[li]
  ln_g = pp[0:1, :wp]
  ln_b = pp[1:2, :wp]
  b1 = pp[2:3, :ip]
  b2 = pp[3:4, :wp]

  # One PreNormResidual(FeedForward) block.
  h = h_ref[...]
  y = _layernorm(h, ln_g, ln_b, inv_w)
  y = (jnp.dot(y.astype(jnp.bfloat16), wff1_ref[li],
               preferred_element_type=jnp.float32) + b1)
  y = _gelu_exact(y)
  y = (jnp.dot(y.astype(jnp.bfloat16), wff2_ref[li],
               preferred_element_type=jnp.float32) + b2)
  h = h + y            # residual; Dropout is identity in eval mode
  h_ref[...] = h

  # Final LayerNorm + output projection on the last layer step.
  @pl.when(layer == pl.num_programs(1) - 1)
  def _():
    z = _layernorm(h, lnf_g_ref[...], lnf_b_ref[...], inv_w)
    out = (jnp.dot(z.astype(jnp.bfloat16), w_out_ref[...],
                   preferred_element_type=jnp.float32) + b_out_ref[...])
    o_ref[...] = out.astype(o_ref.dtype)


# ------------------------------- wrapper ------------------------------------

def _round_up(x, m):
  return (x + m - 1) // m * m


def _tpu_config():
  """Returns (vmem_capacity_bytes, is_v5e, is_v7x). Defensive: unknown -> v6e-like."""
  kind = ""
  try:
    kind = (jax.devices()[0].device_kind or "").lower().replace(" ", "")
  except Exception:
    pass
  cap = None
  try:
    cap = int(pltpu.get_tpu_info().vmem_capacity_bytes)
  except Exception:
    cap = None
  is_v5e = ("v5lite" in kind) or ("v5e" in kind)
  is_v7x = ("tpu7" in kind) or ("v7" in kind) or (
      cap is not None and cap <= 80 * 2**20)
  if cap is None:
    cap = (64 if is_v7x else 128) * 2**20
  return cap, is_v5e, is_v7x


def mlp_mixer_forward(x, params, *, row_tile=None):
  """x: (B, S, emb_dim) float32 -> (B, S, emb_dim). row_tile=None -> auto."""
  B, S, E = x.shape
  N = B * S
  L = params["ln_g"].shape[0]
  W = params["ln_g"].shape[-1]
  I = params["wff1"].shape[-1]
  assert L >= 1

  f32, bf16 = jnp.float32, jnp.bfloat16
  cap, is_v5e, is_v7x = _tpu_config()

  # Lane padding: 256-multiples feed the 2x256x256 MXU on v6e/v7x when the dim
  # is large enough to amortize extra weight bytes; 128 otherwise and on v5e.
  def pad_dim(d):
    if (not is_v5e) and d >= 256:
      return _round_up(d, 256)
    return _round_up(d, 128)

  Ep, Wp, Ip = pad_dim(E), pad_dim(W), pad_dim(I)
  Cp = max(Wp, Ip)

  # ---- generation-aware row tile + weight-residency selection ---------------
  budget = int(cap * (0.75 if is_v7x else 0.8))   # scoped-VMEM we may request
  fit_budget = int(0.85 * budget)                 # headroom over our estimate

  rt_cap = _round_up(N, 16)
  if is_v7x and N >= 32:
    # v7x: 2 TensorCores per chip -> keep at least 2 row blocks to shard.
    rt_cap = min(rt_cap, _round_up((N + 1) // 2, 16))
  if row_tile is not None:
    rt_cap = min(rt_cap, _round_up(int(row_tile), 16))

  base = (512, 384, 256) if (is_v5e or is_v7x) else (1024, 768, 512, 384, 256)
  cands = sorted({max(16, min(c, rt_cap)) for c in base}, reverse=True)

  per_layer_w = 2 * Wp * Ip * 2 + 8 * Cp * 4          # bf16 FF pair + param slab
  const_bytes = 2 * Ep * Wp * 2 + (3 * Wp + Ep) * 4   # in/out proj + small biases

  def ws_bytes(rt, resident):
    io = 2 * rt * Ep * 2 + 2 * rt * Ep * 4   # x (bf16) + out (f32), double-buffered
    scratch = rt * Wp * 4                    # persistent hidden state h
    interm = 4 * rt * Cp * 4                 # LN/GELU/FF f32 temporaries (slack)
    wts = (L if resident else 2) * per_layer_w
    return io + scratch + interm + wts + const_bytes

  resident, rt = False, cands[-1]
  for res in (True, False):     # prefer all-resident weights: no re-streaming
    found = next((c for c in cands if ws_bytes(c, res) <= fit_budget), None)
    if found is not None:
      resident, rt = res, found
      break

  Np = _round_up(N, rt)
  num_row_blocks = Np // rt

  # ---- padding / packing -----------------------------------------------------
  def pad2(a, r, c, dtype):
    out = jnp.zeros((r, c), dtype)
    return out.at[:a.shape[0], :a.shape[1]].set(a.astype(dtype))

  def pad3(a, d0, d1, d2, dtype):
    out = jnp.zeros((d0, d1, d2), dtype)
    return out.at[:a.shape[0], :a.shape[1], :a.shape[2]].set(a.astype(dtype))

  x2 = pad2(x.reshape(N, E), Np, Ep, bf16)   # ship bf16: halves x DMA / VMEM
  w_in = pad2(params["w_in"], Ep, Wp, bf16)
  b_in = pad2(params["b_in"], 1, Wp, f32)
  lnf_g = pad2(params["lnf_g"], 1, Wp, f32)
  lnf_b = pad2(params["lnf_b"], 1, Wp, f32)
  w_out = pad2(params["w_out"], Wp, Ep, bf16)
  b_out = pad2(params["b_out"], 1, Ep, f32)
  wff1 = pad3(params["wff1"], L, Wp, Ip, bf16)
  wff2 = pad3(params["wff2"], L, Ip, Wp, bf16)

  # Pack the four tiny per-layer 1-row params into one (L, 8, Cp) f32 slab:
  # row 0 = ln_gamma, 1 = ln_beta, 2 = bias_ff1, 3 = bias_ff2 (rest zero).
  pp = jnp.zeros((L, 8, Cp), f32)
  pp = pp.at[:, 0, :W].set(params["ln_g"][:, 0, :].astype(f32))
  pp = pp.at[:, 1, :W].set(params["ln_b"][:, 0, :].astype(f32))
  pp = pp.at[:, 2, :I].set(params["bff1"][:, 0, :].astype(f32))
  pp = pp.at[:, 3, :W].set(params["bff2"][:, 0, :].astype(f32))

  # ---- BlockSpecs -------------------------------------------------------------
  def const_spec(shape):
    zeros = (0,) * len(shape)
    return pl.BlockSpec(shape, lambda r, l, _z=zeros: _z,
                        pipeline_mode=pl.Buffered(1))

  if resident:
    # All layers' weights resident in VMEM: fetched exactly once for the call.
    pp_spec = const_spec((L, 8, Cp))
    wff1_spec = const_spec((L, Wp, Ip))
    wff2_spec = const_spec((L, Ip, Wp))
  else:
    # Streamed one layer per grid step (double-buffered by the pipeline).
    pp_spec = pl.BlockSpec((1, 8, Cp), lambda r, l: (l, 0, 0))
    wff1_spec = pl.BlockSpec((1, Wp, Ip), lambda r, l: (l, 0, 0))
    wff2_spec = pl.BlockSpec((1, Ip, Wp), lambda r, l: (l, 0, 0))

  in_specs = [
      pl.BlockSpec((rt, Ep), lambda r, l: (r, 0)),   # x rows (constant over l)
      const_spec((Ep, Wp)), const_spec((1, Wp)),     # input Linear
      pp_spec, wff1_spec, wff2_spec,                 # per-layer params / FF weights
      const_spec((1, Wp)), const_spec((1, Wp)),      # final LN gamma/beta
      const_spec((Wp, Ep)), const_spec((1, Ep)),     # output Linear
  ]
  out_spec = pl.BlockSpec((rt, Ep), lambda r, l: (r, 0))

  vmem_limit = int(min(budget, max(2 * ws_bytes(rt, resident), 48 * 2**20)))

  kernel = functools.partial(mlp_mixer_kernel, W, Wp, Ip, resident)
  out = pl.pallas_call(
      kernel,
      out_shape=jax.ShapeDtypeStruct((Np, Ep), x.dtype),
      grid=(num_row_blocks, L),
      in_specs=in_specs,
      out_specs=out_spec,
      scratch_shapes=[pltpu.VMEM((rt, Wp), jnp.float32)],
      compiler_params=pltpu.CompilerParams(
          dimension_semantics=("parallel", "arbitrary"),
          vmem_limit_bytes=vmem_limit),
  )(x2, w_in, b_in, pp, wff1, wff2, lnf_g, lnf_b, w_out, b_out)

  return out[:N, :E].reshape(B, S, E)


# --------------------------- parameter creation ------------------------------

def init_params(key, emb_dim, width, num_layers):
  inner = int(width * 2)  # FeedForward(width, expansion_factor=2)

  def lin(k, fan_in, fan_out):
    # PyTorch nn.Linear default init: U(-1/sqrt(fan_in), 1/sqrt(fan_in)).
    bound = 1.0 / math.sqrt(fan_in)
    kw, kb = jax.random.split(k)
    w = jax.random.uniform(kw, (fan_in, fan_out), jnp.float32, -bound, bound)
    b = jax.random.uniform(kb, (1, fan_out), jnp.float32, -bound, bound)
    return w, b

  ks = jax.random.split(key, 3)
  w_in, b_in = lin(ks[0], emb_dim, width)
  w_out, b_out = lin(ks[1], width, emb_dim)

  lkeys = jax.random.split(ks[2], 2 * num_layers)
  wff1, bff1, wff2, bff2 = [], [], [], []
  for i in range(num_layers):
    w1, b1 = lin(lkeys[2 * i], width, inner)
    w2, b2 = lin(lkeys[2 * i + 1], inner, width)
    wff1.append(w1); bff1.append(b1)
    wff2.append(w2); bff2.append(b2)

  return dict(
      w_in=w_in, b_in=b_in,
      ln_g=jnp.ones((num_layers, 1, width), jnp.float32),   # PyTorch LN init
      ln_b=jnp.zeros((num_layers, 1, width), jnp.float32),
      wff1=jnp.stack(wff1), bff1=jnp.stack(bff1),            # (L, 1, inner)
      wff2=jnp.stack(wff2), bff2=jnp.stack(bff2),            # (L, 1, width)
      lnf_g=jnp.ones((1, width), jnp.float32),
      lnf_b=jnp.zeros((1, width), jnp.float32),
      w_out=w_out, b_out=b_out,
  )


# ------------------------------ pure-JAX ref ---------------------------------

def _ref_layernorm(x, gamma, beta, eps=1e-5):
  mean = jnp.mean(x, axis=-1, keepdims=True)
  xc = x - mean
  var = jnp.mean(xc * xc, axis=-1, keepdims=True)
  return xc * jax.lax.rsqrt(var + eps) * gamma + beta


def _ref_dot(a, b):
  # Match the kernel: bf16 matmul operands, f32 (MXU) accumulation.
  return jnp.dot(a.astype(jnp.bfloat16), b.astype(jnp.bfloat16),
                 preferred_element_type=jnp.float32)


def mlp_mixer_ref(x, params):
  B, S, E = x.shape
  h = _ref_dot(x.reshape(B * S, E), params["w_in"]) + params["b_in"]
  L = params["ln_g"].shape[0]
  for i in range(L):
    y = _ref_layernorm(h, params["ln_g"][i], params["ln_b"][i])
    y = _ref_dot(y, params["wff1"][i]) + params["bff1"][i]
    y = 0.5 * y * (1.0 + jax.scipy.special.erf(y / math.sqrt(2.0)))
    y = _ref_dot(y, params["wff2"][i]) + params["bff2"][i]
    h = h + y
  h = _ref_layernorm(h, params["lnf_g"], params["lnf_b"])
  out = _ref_dot(h, params["w_out"]) + params["b_out"]
  return out.reshape(B, S, E)


# ---------------------------------- main -------------------------------------

if __name__ == "__main__":
  B, S, EMB, WIDTH, NUM_LAYERS = 2, 8, 16, 32, 2

  key = jax.random.PRNGKey(0)
  kx, kp = jax.random.split(key)
  x = jax.random.normal(kx, (B, S, EMB), jnp.float32)
  params = init_params(kp, EMB, WIDTH, NUM_LAYERS)

  out = jax.block_until_ready(mlp_mixer_forward(x, params))

  ref = mlp_mixer_ref(x, params)
  assert out.shape == (B, S, EMB)
  max_err = float(jnp.max(jnp.abs(out - ref)))
  if not bool(jnp.allclose(out, ref, atol=2e-2, rtol=2e-2)):
    raise AssertionError(f"kernel/reference mismatch, max abs err = {max_err}")

  print("KERNEL_OK")
</pallas_src>

<mosaic_0001>
module attributes {stable_mosaic.version = 11 : i64} {
  func.func @mlp_mixer_kernel(%arg0: i32, %arg1: i32, %arg2: memref<16x128xbf16, #tpu.memory_space<vmem>>, %arg3: memref<128x128xbf16, #tpu.memory_space<vmem>>, %arg4: memref<1x128xf32, #tpu.memory_space<vmem>>, %arg5: memref<2x8x128xf32, #tpu.memory_space<vmem>>, %arg6: memref<2x128x128xbf16, #tpu.memory_space<vmem>>, %arg7: memref<2x128x128xbf16, #tpu.memory_space<vmem>>, %arg8: memref<1x128xf32, #tpu.memory_space<vmem>>, %arg9: memref<1x128xf32, #tpu.memory_space<vmem>>, %arg10: memref<128x128xbf16, #tpu.memory_space<vmem>>, %arg11: memref<1x128xf32, #tpu.memory_space<vmem>>, %arg12: memref<16x128xf32, #tpu.memory_space<vmem>>, %arg13: memref<16x128xf32, #tpu.memory_space<vmem>>) attributes {dimension_semantics = [#tpu.dimension_semantics<parallel>, #tpu.dimension_semantics<arbitrary>], iteration_bounds = array<i64: 1, 2>, scalar_prefetch = 0 : i64, scratch_operands = 1 : i64, tpu.core_type = #tpu.core_type<tc>, window_params = [{transform_indices = @transform_0, window_bounds = array<i64: 16, 128>}, {pipeline_mode = #tpu.pipeline_mode<synchronous>, transform_indices = @transform_1, window_bounds = array<i64: 128, 128>}, {pipeline_mode = #tpu.pipeline_mode<synchronous>, transform_indices = @transform_2, window_bounds = array<i64: 1, 128>}, {pipeline_mode = #tpu.pipeline_mode<synchronous>, transform_indices = @transform_3, window_bounds = array<i64: 2, 8, 128>}, {pipeline_mode = #tpu.pipeline_mode<synchronous>, transform_indices = @transform_4, window_bounds = array<i64: 2, 128, 128>}, {pipeline_mode = #tpu.pipeline_mode<synchronous>, transform_indices = @transform_5, window_bounds = array<i64: 2, 128, 128>}, {pipeline_mode = #tpu.pipeline_mode<synchronous>, transform_indices = @transform_6, window_bounds = array<i64: 1, 128>}, {pipeline_mode = #tpu.pipeline_mode<synchronous>, transform_indices = @transform_7, window_bounds = array<i64: 1, 128>}, {pipeline_mode = #tpu.pipeline_mode<synchronous>, transform_indices = @transform_8, window_bounds = array<i64: 128, 128>}, {pipeline_mode = #tpu.pipeline_mode<synchronous>, transform_indices = @transform_9, window_bounds = array<i64: 1, 128>}, {transform_indices = @transform_10, window_bounds = array<i64: 16, 128>}]} {
    %c0_i32 = arith.constant 0 : i32
    %0 = arith.cmpi eq, %arg1, %c0_i32 : i32
    %1 = arith.extui %0 : i1 to i32
    %c0_i32_0 = arith.constant 0 : i32
    %2 = arith.cmpi ne, %1, %c0_i32_0 : i32
    scf.if %2 {
      %c0_32 = arith.constant 0 : index
      %c0_33 = arith.constant 0 : index
      %93 = vector.load %arg2[%c0_32, %c0_33] : memref<16x128xbf16, #tpu.memory_space<vmem>>, vector<16x128xbf16>
      %c0_34 = arith.constant 0 : index
      %c0_35 = arith.constant 0 : index
      %94 = vector.load %arg3[%c0_34, %c0_35] : memref<128x128xbf16, #tpu.memory_space<vmem>>, vector<128x128xbf16>
      %cst_36 = arith.constant dense<0.000000e+00> : vector<16x128xf32>
      %95 = tpu.matmul %93, %94, %cst_36 {dimension_numbers = #tpu.dot_dimension_numbers<[1], [0], [0], [1], [0, 0, 1, 1], [], []>} : vector<16x128xbf16>, vector<128x128xbf16>, vector<16x128xf32> -> vector<16x128xf32>
      %c0_37 = arith.constant 0 : index
      %c0_38 = arith.constant 0 : index
      %96 = vector.load %arg4[%c0_37, %c0_38] : memref<1x128xf32, #tpu.memory_space<vmem>>, vector<1x128xf32>
      %97 = vector.broadcast %96 : vector<1x128xf32> to vector<16x128xf32>
      %98 = arith.addf %95, %97 : vector<16x128xf32>
      %c0_39 = arith.constant 0 : index
      %c0_40 = arith.constant 0 : index
      %99 = vector.load %arg13[%c0_39, %c0_40] : memref<16x128xf32, #tpu.memory_space<vmem>>, vector<16x128xf32>
      tpu.vector_store %arg13[%c0_39, %c0_40], %98 {strides = array<i32>} : memref<16x128xf32, #tpu.memory_space<vmem>>, vector<16x128xf32>,
    } else {
    }
    %3 = arith.index_cast %arg1 : i32 to index
    %c0 = arith.constant 0 : index
    %c0_1 = arith.constant 0 : index
    %4 = vector.load %arg5[%3, %c0, %c0_1] : memref<2x8x128xf32, #tpu.memory_space<vmem>>, vector<1x8x128xf32>
    %5 = vector.shape_cast %4 : vector<1x8x128xf32> to vector<8x128xf32>
    %6 = vector.extract_strided_slice %5 {offsets = [0, 0], sizes = [1, 128], strides = [1, 1]} : vector<8x128xf32> to vector<1x128xf32>
    %7 = vector.extract_strided_slice %5 {offsets = [1, 0], sizes = [1, 128], strides = [1, 1]} : vector<8x128xf32> to vector<1x128xf32>
    %8 = vector.extract_strided_slice %5 {offsets = [2, 0], sizes = [1, 128], strides = [1, 1]} : vector<8x128xf32> to vector<1x128xf32>
    %9 = vector.extract_strided_slice %5 {offsets = [3, 0], sizes = [1, 128], strides = [1, 1]} : vector<8x128xf32> to vector<1x128xf32>
    %c0_2 = arith.constant 0 : index
    %c0_3 = arith.constant 0 : index
    %10 = vector.load %arg13[%c0_2, %c0_3] : memref<16x128xf32, #tpu.memory_space<vmem>>, vector<16x128xf32>
    %cst = arith.constant dense<0.000000e+00> : vector<16xf32>
    %11 = vector.multi_reduction <add>, %10, %cst [1] : vector<16x128xf32> to vector<16xf32>
    %12 = vector.shape_cast %11 : vector<16xf32> to vector<16x1xf32>
    %13 = arith.mulf %10, %10 : vector<16x128xf32>
    %cst_4 = arith.constant dense<0.000000e+00> : vector<16xf32>
    %14 = vector.multi_reduction <add>, %13, %cst_4 [1] : vector<16x128xf32> to vector<16xf32>
    %15 = vector.shape_cast %14 : vector<16xf32> to vector<16x1xf32>
    %cst_5 = arith.constant 3.125000e-02 : f32
    %16 = vector.broadcast %cst_5 : f32 to vector<16x1xf32>
    %17 = arith.mulf %12, %16 : vector<16x1xf32>
    %cst_6 = arith.constant 3.125000e-02 : f32
    %18 = vector.broadcast %cst_6 : f32 to vector<16x1xf32>
    %19 = arith.mulf %15, %18 : vector<16x1xf32>
    %20 = arith.mulf %17, %17 : vector<16x1xf32>
    %21 = arith.subf %19, %20 : vector<16x1xf32>
    %cst_7 = arith.constant 0.000000e+00 : f32
    %22 = vector.broadcast %cst_7 : f32 to vector<16x1xf32>
    %23 = arith.maximumf %21, %22 : vector<16x1xf32>
    %24 = vector.broadcast %17 : vector<16x1xf32> to vector<16x128xf32>
    %25 = arith.subf %10, %24 : vector<16x128xf32>
    %cst_8 = arith.constant 9.99999974E-6 : f32
    %26 = vector.broadcast %cst_8 : f32 to vector<16x1xf32>
    %27 = arith.addf %23, %26 : vector<16x1xf32>
    %28 = math.rsqrt %27 : vector<16x1xf32>
    %29 = vector.broadcast %28 : vector<16x1xf32> to vector<16x128xf32>
    %30 = arith.mulf %25, %29 : vector<16x128xf32>
    %31 = vector.broadcast %6 : vector<1x128xf32> to vector<16x128xf32>
    %32 = arith.mulf %30, %31 : vector<16x128xf32>
    %33 = vector.broadcast %7 : vector<1x128xf32> to vector<16x128xf32>
    %34 = arith.addf %32, %33 : vector<16x128xf32>
    %35 = arith.truncf %34 : vector<16x128xf32> to vector<16x128xbf16>
    %36 = arith.index_cast %arg1 : i32 to index
    %c0_9 = arith.constant 0 : index
    %c0_10 = arith.constant 0 : index
    %37 = vector.load %arg6[%36, %c0_9, %c0_10] : memref<2x128x128xbf16, #tpu.memory_space<vmem>>, vector<1x128x128xbf16>
    %38 = vector.shape_cast %37 : vector<1x128x128xbf16> to vector<128x128xbf16>
    %cst_11 = arith.constant dense<0.000000e+00> : vector<16x128xf32>
    %39 = tpu.matmul %35, %38, %cst_11 {dimension_numbers = #tpu.dot_dimension_numbers<[1], [0], [0], [1], [0, 0, 1, 1], [], []>} : vector<16x128xbf16>, vector<128x128xbf16>, vector<16x128xf32> -> vector<16x128xf32>
    %40 = vector.broadcast %8 : vector<1x128xf32> to vector<16x128xf32>
    %41 = arith.addf %39, %40 : vector<16x128xf32>
    %cst_12 = arith.constant 5.000000e-01 : f32
    %42 = vector.broadcast %cst_12 : f32 to vector<16x128xf32>
    %43 = arith.mulf %42, %41 : vector<16x128xf32>
    %cst_13 = arith.constant 0.707106769 : f32
    %44 = vector.broadcast %cst_13 : f32 to vector<16x128xf32>
    %45 = arith.mulf %41, %44 : vector<16x128xf32>
    %46 = math.absf %45 : vector<16x128xf32>
    %cst_14 = arith.constant 0.327591091 : f32
    %47 = vector.broadcast %cst_14 : f32 to vector<16x128xf32>
    %48 = arith.mulf %47, %46 : vector<16x128xf32>
    %cst_15 = arith.constant 1.000000e+00 : f32
    %49 = vector.broadcast %cst_15 : f32 to vector<16x128xf32>
    %50 = arith.addf %49, %48 : vector<16x128xf32>
    %51 = tpu.reciprocal %50 {approx = true} : vector<16x128xf32> -> vector<16x128xf32>
    %cst_16 = arith.constant 1.06140542 : f32
    %52 = vector.broadcast %cst_16 : f32 to vector<16x128xf32>
    %53 = arith.mulf %52, %51 : vector<16x128xf32>
    %cst_17 = arith.constant -1.45315206 : f32
    %54 = vector.broadcast %cst_17 : f32 to vector<16x128xf32>
    %55 = arith.addf %53, %54 : vector<16x128xf32>
    %56 = arith.mulf %55, %51 : vector<16x128xf32>
    %cst_18 = arith.constant 1.42141378 : f32
    %57 = vector.broadcast %cst_18 : f32 to vector<16x128xf32>
    %58 = arith.addf %56, %57 : vector<16x128xf32>
    %59 = arith.mulf %58, %51 : vector<16x128xf32>
    %cst_19 = arith.constant -0.284496725 : f32
    %60 = vector.broadcast %cst_19 : f32 to vector<16x128xf32>
    %61 = arith.addf %59, %60 : vector<16x128xf32>
    %62 = arith.mulf %61, %51 : vector<16x128xf32>
    %cst_20 = arith.constant 0.254829586 : f32
    %63 = vector.broadcast %cst_20 : f32 to vector<16x128xf32>
    %64 = arith.addf %62, %63 : vector<16x128xf32>
    %65 = arith.mulf %64, %51 : vector<16x128xf32>
    %cst_21 = arith.constant 0.000000e+00 : f32
    %66 = vector.broadcast %cst_21 : f32 to vector<16x128xf32>
    %67 = arith.subf %66, %46 : vector<16x128xf32>
    %68 = arith.mulf %67, %46 : vector<16x128xf32>
    %69 = math.exp %68 : vector<16x128xf32>
    %70 = arith.mulf %65, %69 : vector<16x128xf32>
    %cst_22 = arith.constant 1.000000e+00 : f32
    %71 = vector.broadcast %cst_22 : f32 to vector<16x128xf32>
    %72 = arith.subf %71, %70 : vector<16x128xf32>
    %cst_23 = arith.constant 0.000000e+00 : f32
    %73 = vector.broadcast %cst_23 : f32 to vector<16x128xf32>
    %74 = arith.cmpf oge, %45, %73 : vector<16x128xf32>
    %cst_24 = arith.constant 0.000000e+00 : f32
    %75 = vector.broadcast %cst_24 : f32 to vector<16x128xf32>
    %76 = arith.subf %75, %72 : vector<16x128xf32>
    %77 = arith.select %74, %72, %76 : vector<16x128xi1>, vector<16x128xf32>
    %cst_25 = arith.constant 1.000000e+00 : f32
    %78 = vector.broadcast %cst_25 : f32 to vector<16x128xf32>
    %79 = arith.addf %78, %77 : vector<16x128xf32>
    %80 = arith.mulf %43, %79 : vector<16x128xf32>
    %81 = arith.truncf %80 : vector<16x128xf32> to vector<16x128xbf16>
    %82 = arith.index_cast %arg1 : i32 to index
    %c0_26 = arith.constant 0 : index
    %c0_27 = arith.constant 0 : index
    %83 = vector.load %arg7[%82, %c0_26, %c0_27] : memref<2x128x128xbf16, #tpu.memory_space<vmem>>, vector<1x128x128xbf16>
    %84 = vector.shape_cast %83 : vector<1x128x128xbf16> to vector<128x128xbf16>
    %cst_28 = arith.constant dense<0.000000e+00> : vector<16x128xf32>
    %85 = tpu.matmul %81, %84, %cst_28 {dimension_numbers = #tpu.dot_dimension_numbers<[1], [0], [0], [1], [0, 0, 1, 1], [], []>} : vector<16x128xbf16>, vector<128x128xbf16>, vector<16x128xf32> -> vector<16x128xf32>
    %86 = vector.broadcast %9 : vector<1x128xf32> to vector<16x128xf32>
    %87 = arith.addf %85, %86 : vector<16x128xf32>
    %88 = arith.addf %10, %87 : vector<16x128xf32>
    %c0_29 = arith.constant 0 : index
    %c0_30 = arith.constant 0 : index
    %89 = vector.load %arg13[%c0_29, %c0_30] : memref<16x128xf32, #tpu.memory_space<vmem>>, vector<16x128xf32>
    tpu.vector_store %arg13[%c0_29, %c0_30], %88 {strides = array<i32>} : memref<16x128xf32, #tpu.memory_space<vmem>>, vector<16x128xf32>,
    %c1_i32 = arith.constant 1 : i32
    %90 = arith.cmpi eq, %arg1, %c1_i32 : i32
    %91 = arith.extui %90 : i1 to i32
    %c0_i32_31 = arith.constant 0 : i32
    %92 = arith.cmpi ne, %91, %c0_i32_31 : i32
    scf.if %92 {
      %c0_32 = arith.constant 0 : index
      %c0_33 = arith.constant 0 : index
      %93 = vector.load %arg8[%c0_32, %c0_33] : memref<1x128xf32, #tpu.memory_space<vmem>>, vector<1x128xf32>
      %c0_34 = arith.constant 0 : index
      %c0_35 = arith.constant 0 : index
      %94 = vector.load %arg9[%c0_34, %c0_35] : memref<1x128xf32, #tpu.memory_space<vmem>>, vector<1x128xf32>
      %cst_36 = arith.constant dense<0.000000e+00> : vector<16xf32>
      %95 = vector.multi_reduction <add>, %88, %cst_36 [1] : vector<16x128xf32> to vector<16xf32>
      %96 = vector.shape_cast %95 : vector<16xf32> to vector<16x1xf32>
      %97 = arith.mulf %88, %88 : vector<16x128xf32>
      %cst_37 = arith.constant dense<0.000000e+00> : vector<16xf32>
      %98 = vector.multi_reduction <add>, %97, %cst_37 [1] : vector<16x128xf32> to vector<16xf32>
      %99 = vector.shape_cast %98 : vector<16xf32> to vector<16x1xf32>
      %cst_38 = arith.constant 3.125000e-02 : f32
      %100 = vector.broadcast %cst_38 : f32 to vector<16x1xf32>
      %101 = arith.mulf %96, %100 : vector<16x1xf32>
      %cst_39 = arith.constant 3.125000e-02 : f32
      %102 = vector.broadcast %cst_39 : f32 to vector<16x1xf32>
      %103 = arith.mulf %99, %102 : vector<16x1xf32>
      %104 = arith.mulf %101, %101 : vector<16x1xf32>
      %105 = arith.subf %103, %104 : vector<16x1xf32>
      %cst_40 = arith.constant 0.000000e+00 : f32
      %106 = vector.broadcast %cst_40 : f32 to vector<16x1xf32>
      %107 = arith.maximumf %105, %106 : vector<16x1xf32>
      %108 = vector.broadcast %101 : vector<16x1xf32> to vector<16x128xf32>
      %109 = arith.subf %88, %108 : vector<16x128xf32>
      %cst_41 = arith.constant 9.99999974E-6 : f32
      %110 = vector.broadcast %cst_41 : f32 to vector<16x1xf32>
      %111 = arith.addf %107, %110 : vector<16x1xf32>
      %112 = math.rsqrt %111 : vector<16x1xf32>
      %113 = vector.broadcast %112 : vector<16x1xf32> to vector<16x128xf32>
      %114 = arith.mulf %109, %113 : vector<16x128xf32>
      %115 = vector.broadcast %93 : vector<1x128xf32> to vector<16x128xf32>
      %116 = arith.mulf %114, %115 : vector<16x128xf32>
      %117 = vector.broadcast %94 : vector<1x128xf32> to vector<16x128xf32>
      %118 = arith.addf %116, %117 : vector<16x128xf32>
      %119 = arith.truncf %118 : vector<16x128xf32> to vector<16x128xbf16>
      %c0_42 = arith.constant 0 : index
      %c0_43 = arith.constant 0 : index
      %120 = vector.load %arg10[%c0_42, %c0_43] : memref<128x128xbf16, #tpu.memory_space<vmem>>, vector<128x128xbf16>
      %cst_44 = arith.constant dense<0.000000e+00> : vector<16x128xf32>
      %121 = tpu.matmul %119, %120, %cst_44 {dimension_numbers = #tpu.dot_dimension_numbers<[1], [0], [0], [1], [0, 0, 1, 1], [], []>} : vector<16x128xbf16>, vector<128x128xbf16>, vector<16x128xf32> -> vector<16x128xf32>
      %c0_45 = arith.constant 0 : index
      %c0_46 = arith.constant 0 : index
      %122 = vector.load %arg11[%c0_45, %c0_46] : memref<1x128xf32, #tpu.memory_space<vmem>>, vector<1x128xf32>
      %123 = vector.broadcast %122 : vector<1x128xf32> to vector<16x128xf32>
      %124 = arith.addf %121, %123 : vector<16x128xf32>
      %c0_47 = arith.constant 0 : index
      %c0_48 = arith.constant 0 : index
      %125 = vector.load %arg12[%c0_47, %c0_48] : memref<16x128xf32, #tpu.memory_space<vmem>>, vector<16x128xf32>
      tpu.vector_store %arg12[%c0_47, %c0_48], %124 {strides = array<i32>} : memref<16x128xf32, #tpu.memory_space<vmem>>, vector<16x128xf32>,
    } else {
    }
    return
  }
  func.func @transform_0(%arg0: i32, %arg1: i32) -> (i32, i32) {
    %c0_i32 = arith.constant 0 : i32
    %c0_i32_0 = arith.constant 0 : i32
    return %arg0, %c0_i32 : i32, i32
  }
  func.func @transform_1(%arg0: i32, %arg1: i32) -> (i32, i32) {
    %c0_i32 = arith.constant 0 : i32
    %c0_i32_0 = arith.constant 0 : i32
    %c0_i32_1 = arith.constant 0 : i32
    return %c0_i32, %c0_i32_0 : i32, i32
  }
  func.func @transform_2(%arg0: i32, %arg1: i32) -> (i32, i32) {
    %c0_i32 = arith.constant 0 : i32
    %c0_i32_0 = arith.constant 0 : i32
    %c0_i32_1 = arith.constant 0 : i32
    return %c0_i32, %c0_i32_0 : i32, i32
  }
  func.func @transform_3(%arg0: i32, %arg1: i32) -> (i32, i32, i32) {
    %c0_i32 = arith.constant 0 : i32
    %c0_i32_0 = arith.constant 0 : i32
    %c0_i32_1 = arith.constant 0 : i32
    %c0_i32_2 = arith.constant 0 : i32
    return %c0_i32, %c0_i32_0, %c0_i32_1 : i32, i32, i32
  }
  func.func @transform_4(%arg0: i32, %arg1: i32) -> (i32, i32, i32) {
    %c0_i32 = arith.constant 0 : i32
    %c0_i32_0 = arith.constant 0 : i32
    %c0_i32_1 = arith.constant 0 : i32
    %c0_i32_2 = arith.constant 0 : i32
    return %c0_i32, %c0_i32_0, %c0_i32_1 : i32, i32, i32
  }
  func.func @transform_5(%arg0: i32, %arg1: i32) -> (i32, i32, i32) {
    %c0_i32 = arith.constant 0 : i32
    %c0_i32_0 = arith.constant 0 : i32
    %c0_i32_1 = arith.constant 0 : i32
    %c0_i32_2 = arith.constant 0 : i32
    return %c0_i32, %c0_i32_0, %c0_i32_1 : i32, i32, i32
  }
  func.func @transform_6(%arg0: i32, %arg1: i32) -> (i32, i32) {
    %c0_i32 = arith.constant 0 : i32
    %c0_i32_0 = arith.constant 0 : i32
    %c0_i32_1 = arith.constant 0 : i32
    return %c0_i32, %c0_i32_0 : i32, i32
  }
  func.func @transform_7(%arg0: i32, %arg1: i32) -> (i32, i32) {
    %c0_i32 = arith.constant 0 : i32
    %c0_i32_0 = arith.constant 0 : i32
    %c0_i32_1 = arith.constant 0 : i32
    return %c0_i32, %c0_i32_0 : i32, i32
  }
  func.func @transform_8(%arg0: i32, %arg1: i32) -> (i32, i32) {
    %c0_i32 = arith.constant 0 : i32
    %c0_i32_0 = arith.constant 0 : i32
    %c0_i32_1 = arith.constant 0 : i32
    return %c0_i32, %c0_i32_0 : i32, i32
  }
  func.func @transform_9(%arg0: i32, %arg1: i32) -> (i32, i32) {
    %c0_i32 = arith.constant 0 : i32
    %c0_i32_0 = arith.constant 0 : i32
    %c0_i32_1 = arith.constant 0 : i32
    return %c0_i32, %c0_i32_0 : i32, i32
  }
  func.func @transform_10(%arg0: i32, %arg1: i32) -> (i32, i32) {
    %c0_i32 = arith.constant 0 : i32
    %c0_i32_0 = arith.constant 0 : i32
    return %arg0, %c0_i32 : i32, i32
  }
}

</mosaic_0001>

<bundles_post_ra>
// kernel: tpu_custom_call.1
= control target key start
LH: loop header
LB: loop body
LE: loop exit
PB: predicated region body
PF: predicated region fallthrough
CT: control target
= control target key end

     0   :  { %15 = vsyncpa [#allocation4], 0  ;;  %s2025_s0 = inlined_call_operand.hbm [shape: bf16[16,128], index: 0, kind: input, shape index: {}]   ;;  %s2026_s1 = inlined_call_operand.hbm [shape: bf16[128,128], index: 1, kind: input, shape index: {}]   ;;  %s2027_s2 = inlined_call_operand.vmem [shape: f32[1,128], index: 2, kind: input, shape index: {}]   ;;  %s2028_s3 = inlined_call_operand.hbm [shape: f32[2,8,128], index: 3, kind: input, shape index: {}]   ;;  %s2029_s4 = inlined_call_operand.hbm [shape: bf16[2,128,128], index: 4, kind: input, shape index: {}]   ;;  %s2030_s5 = inlined_call_operand.hbm [shape: bf16[2,128,128], index: 5, kind: input, shape index: {}]   ;;  %s2031_s6 = inlined_call_operand.vmem [shape: f32[1,128], index: 6, kind: input, shape index: {}]   ;;  %s2032_s7 = inlined_call_operand.vmem [shape: f32[1,128], index: 7, kind: input, shape index: {}]   ;;  %s2033_s8 = inlined_call_operand.hbm [shape: bf16[128,128], index: 8, kind: input, shape index: {}]   ;;  %s2034_s9 = inlined_call_operand.vmem [shape: f32[1,128], index: 9, kind: input, shape index: {}]   ;;  %s2035_s10 = inlined_call_operand.hbm [shape: f32[16,128], index: 10, kind: output, shape index: {}]  }
   0x1   :  { %16 = vsyncpa [#allocation7], 0 }
   0x2   :  { %17 = vsyncpa [#allocation10], 0 }
   0x3   :  { %18 = vsyncpa [#allocation13], 0 }
   0x4   :  { %19 = vsyncpa [#allocation5], 0  ;;  %s1808_s13 = smov 0   ;;  %s1810_s14 = smov 0  }
   0x5   :  { %s1812_s15 = smov 0  }
   0x6 LB: > { %s2036_s16 = sadd.s32 4294967295, %s1732_s15   ;;  %p1178_p0 = scmp.ge.s32.totalorder %s1732_s15, 1  ;;  %s1732_s15 = sphi %s1812_s15, %s25_s15   ;;  %s1728_s14 = sphi %s1810_s14, %s2047_s14   ;;  %s1724_s13 = sphi %s1808_s13, %s2046_s13  }
   0x7   : > { %p283_p1 = scmp.lt.s32.totalorder %s1732_s15, 3  ;;  %p1828_p2 = scmp.eq.s32.totalorder %s2036_s16, 0 }
   0x8   : > { %s1734_s19 = smov [#allocation6]   ;;  %s1735_s21 = smov [#allocation9]  }
   0x9   : > { %p1832_p3 = pnand %p1178_p0, %p283_p1  ;;  %s311_s20 = sshll.u32 %s1734_s19, 4  ;;  %s312_s20 = int_to_ptr.vmem [resolvable:$true] %s311_s20 }
   0xa   : > { %s340_s22 = sshll.u32 %s1735_s21, 4  ;;  %s34_s24 = sadd.s32 1, %s1728_s14  ;;  %s341_s22 = int_to_ptr.vmem [resolvable:$true] %s340_s22 }
   0xb   : > { %p1385_p4 = pneg %p1832_p3  ;;  %s1521_s26 = scalar_lea.vmem %s312_s20, 1024 }
   0xc   : > { %p1522_p7 = scmp.ne.s32.totalorder %s312_s20, %s1521_s26  ;;  %p1529_p10 = scmp.lt.s32.totalorder %s312_s20, %s312_s20 }
   0xd   : > { %p1840_p5 = pnand %p1828_p2, %p1385_p4  ;;  %p1530_p11 = scmp.lt.s32.totalorder %s1521_s26, %s1521_s26 }
   0xf   : > { %p1847_p6 = pneg %p1840_p5  ;;  %p1531_p12 = por %p1530_p11, %p1529_p10 }
  0x11   : > { %p1524_p8 = pnand %p1522_p7, %p1847_p6 }
  0x13   : > { %p1525_p9 = pneg %p1524_p8 }
  0x15   : > { %p1532_p13 = pnand %p1531_p12, %p1525_p9 }
  0x17   : > { %1535 = shalt.err (!%p1532_p13)
}
  0x18   : > { %s2037_s27 = smov 64   ;;  %s1737_s28 = smov 4  }
  0x19   : > { %1391 = dma.hbm_to_vmem [thread:$0]  (!%p1840_p5), %s2026_s1, 1024, %s312_s20, [#allocation7], %s2037_s27, %s2037_s27, %s1737_s28  }
  0x1a   : > { %s1547_s11 = scalar_lea.vmem %s341_s22, 2048  ;;  %p1555_p7 = scmp.lt.s32.totalorder %s341_s22, %s341_s22 }
  0x1b   : > { %p1548_p0 = scmp.ne.s32.totalorder %s341_s22, %s1547_s11  ;;  %p1556_p8 = scmp.lt.s32.totalorder %s1547_s11, %s1547_s11 }
  0x1d   : > { %p1550_p1 = pnand %p1548_p0, %p1847_p6  ;;  %p1557_p9 = por %p1556_p8, %p1555_p7 }
  0x1f   : > { %p1551_p4 = pneg %p1550_p1 }
  0x21   : > { %p1558_p10 = pnand %p1557_p9, %p1551_p4 }
  0x23   : > { %1561 = shalt.err (!%p1558_p10)
}
  0x24   : > { %1397 = dma.hbm_to_vmem [thread:$0]  (!%p1840_p5), %s2029_s4, 2048, %s341_s22, [#allocation10], %s2037_s27, %s2037_s27, %s1737_s28  }
  0x25   : > { %p35_p11 = scmp.ge.s32.totalorder %s34_s24, 2  ;;  %s1738_s20 = smov [#allocation3]  }
  0x26   : > { %s298_s21 = sshll.u32 %s1738_s20, 4  ;;  %s1739_s26 = smov [#allocation8]   ;;  %s299_s21 = int_to_ptr.vmem [resolvable:$true] %s298_s21 }
  0x27   : > { %s2049_s24 = smov (%p35_p11, %s34_s24), 0  ;;  %s327_s29 = sshll.u32 %s1739_s26, 4  ;;  %s328_s29 = int_to_ptr.vmem [resolvable:$true] %s327_s29 }
  0x28   : > { %s1573_s30 = scalar_lea.vmem %s299_s21, 128  ;;  %p1581_p1 = scmp.lt.s32.totalorder %s299_s21, %s299_s21 }
  0x29   : > { %p1574_p12 = scmp.ne.s32.totalorder %s299_s21, %s1573_s30  ;;  %p1582_p4 = scmp.lt.s32.totalorder %s1573_s30, %s1573_s30 }
  0x2b   : > { %p1576_p13 = pnand %p1574_p12, %p1847_p6  ;;  %p1583_p7 = por %p1582_p4, %p1581_p1 }
  0x2d   : > { %p1577_p0 = pneg %p1576_p13 }
  0x2f   : > { %p1584_p8 = pnand %p1583_p7, %p1577_p0 }
  0x31   : > { %1587 = shalt.err (!%p1584_p8)
}
  0x32   : > { %1388 = dma.hbm_to_vmem [thread:$0]  (!%p1840_p5), %s2025_s0, 128, %s299_s21, [#allocation4], %s2037_s27, %s2037_s27, %s1737_s28  }
  0x33   : > { %s1599_s12 = scalar_lea.vmem %s328_s29, 256  ;;  %p1607_p12 = scmp.lt.s32.totalorder %s328_s29, %s328_s29 }
  0x34   : > { %p1600_p9 = scmp.ne.s32.totalorder %s328_s29, %s1599_s12  ;;  %p1608_p13 = scmp.lt.s32.totalorder %s1599_s12, %s1599_s12 }
  0x36   : > { %p1602_p10 = pnand %p1600_p9, %p1847_p6  ;;  %p1609_p0 = por %p1608_p13, %p1607_p12 }
  0x38   : > { %p1603_p11 = pneg %p1602_p10 }
  0x3a   : > { %p1610_p1 = pnand %p1609_p0, %p1603_p11 }
  0x3c   : > { %1613 = shalt.err (!%p1610_p1)
}
  0x3d   : > { %s1740_s19 = smov 128   ;;  %s1741_s20 = smov 8  }
  0x3e   : > { %1394 = dma.hbm_to_vmem [thread:$0]  (!%p1840_p5), %s2028_s3, 256, %s328_s29, [#allocation7], %s1740_s19, %s1740_s19, %s1741_s20  }
  0x3f   : > { %s1742_s21 = smov [#allocation11]   ;;  %s1743_s11 = smov [#allocation12]  }
  0x40   : > { %s353_s22 = sshll.u32 %s1742_s21, 4  ;;  %s372_s16 = sshll.u32 %s1743_s11, 4  ;;  %s354_s22 = int_to_ptr.vmem [resolvable:$true] %s353_s22  ;;  %s373_s16 = int_to_ptr.vmem [resolvable:$true] %s372_s16 }
  0x41   : > { %s1625_s27 = scalar_lea.vmem %s354_s22, 2048  ;;  %p1633_p9 = scmp.lt.s32.totalorder %s354_s22, %s354_s22 }
  0x42   : > { %p1626_p4 = scmp.ne.s32.totalorder %s354_s22, %s1625_s27  ;;  %p1634_p10 = scmp.lt.s32.totalorder %s1625_s27, %s1625_s27 }
  0x44   : > { %p1628_p7 = pnand %p1626_p4, %p1847_p6  ;;  %p1635_p11 = por %p1634_p10, %p1633_p9 }
  0x46   : > { %p1629_p8 = pneg %p1628_p7 }
  0x48   : > { %p1636_p12 = pnand %p1635_p11, %p1629_p8 }
  0x4a   : > { %1639 = shalt.err (!%p1636_p12)
}
  0x4b   : > { %s2043_s12 = smov 64   ;;  %s1651_s20 = scalar_lea.vmem %s373_s16, 1024 }
  0x4c   : > { %1400 = dma.hbm_to_vmem [thread:$0]  (!%p1840_p5), %s2030_s5, 2048, %s354_s22, [#allocation10], %s2043_s12, %s2043_s12, %s1737_s28  }
  0x4d   : > { %p1652_p13 = scmp.ne.s32.totalorder %s373_s16, %s1651_s20  ;;  %p1659_p4 = scmp.lt.s32.totalorder %s373_s16, %s373_s16 }
  0x4e   : > { %p1660_p7 = scmp.lt.s32.totalorder %s1651_s20, %s1651_s20 }
  0x4f   : > { %p1654_p0 = pnand %p1652_p13, %p1847_p6 }
  0x50   : > { %p1661_p8 = por %p1660_p7, %p1659_p4 }
  0x51   : > { %p1655_p1 = pneg %p1654_p0 }
  0x53   : > { %p1662_p9 = pnand %p1661_p8, %p1655_p1 }
  0x55   : > { %1665 = shalt.err (!%p1662_p9)
}
  0x56   : > { %1403 = dma.hbm_to_vmem [thread:$0]  (!%p1840_p5), %s2033_s8, 1024, %s373_s16, [#allocation13], %s2043_s12, %s2043_s12, %s1737_s28  }
  0x57   : > { %391 = sbr.rel (%p1832_p3) target bundleno = 1360 (0x550), region = 60 }
  0x5c   : > { %1703 = dma.done.wait (%p1828_p2), [#allocation4], 128  }
  0x5d   : > { %1705 = vsyncadd (%p1828_p2), [#allocation4], 4294967168 }
  0x5e   : > { %1707 = dma.done.wait (%p1828_p2), [#allocation7], 1280  }
  0x5f   : > { %1709 = vsyncadd (%p1828_p2), [#allocation7], 4294966016 }
  0x60   : > { %1711 = dma.done.wait (%p1828_p2), [#allocation10], 4096  }
  0x61   : > { %1713 = vsyncadd (%p1828_p2), [#allocation10], 4294963200 }
  0x62   : > { %1715 = dma.done.wait (%p1828_p2), [#allocation13], 1024  }
  0x63   : > { %1717 = vsyncadd (%p1828_p2), [#allocation13], 4294966272  ;;  %p1192_p3 = scmp.ne.s32.totalorder %s1724_s13, 0 }
  0x65   : > { %445 = sbr.rel (%p1192_p3) target bundleno = 339 (0x153), region = 88 }
  0x6a   : > { %v1461_v0 = vld [vmem:[#allocation6 + $0x38] sm:$0xff]   ;;  %v1744_v1 = vmov 0.0   ;;  %v1462_v2 = vld [vmem:[#allocation6 + $0x30] sm:$0xff]   ;;  %vm1745_vm0 = vmmov 0   ;;  %v1463_v3 = vld [vmem:[#allocation6 + $0x28] sm:$0xff]  }
  0x6b   : > { %1277 = vmatprep.subr.bf16.mxu0 %v1744_v1  ;;  %1293 = vmatprep.mubr.msk.bf16.mxu0 %vm1745_vm0, %v1744_v1  ;;  %v1464_v4 = vld [vmem:[#allocation6 + $0x20] sm:$0xff]   ;;  %v1465_v5 = vld [vmem:[#allocation6 + $0x18] sm:$0xff]   ;;  %v1466_v6 = vld [vmem:[#allocation6 + $0x10] sm:$0xff]  }
  0x6c   : > { %1278 = vmatpush3.bf16.msra.mxu0 %v1461_v0  ;;  %v1467_v7 = vld [vmem:[#allocation6 + $0x8] sm:$0xff]   ;;  %v1468_v8 = vld [vmem:[#allocation6] sm:$0xff]   ;;  %v1469_v9 = vld [vmem:[#allocation3] sm:$0xff]  }
  0x6d   : > { %1279 = vmatprep.subr.bf16.mxu0 %v1744_v1  ;;  %v1193_v10 = vld [vmem:[%s2027_s2] ss:$0 sm:$0xff] }
  0x70   : > { %1280 = vmatpush3.bf16.msra.mxu0 %v1462_v2 }
  0x71   : > { %1281 = vmatprep.subr.bf16.mxu0 %v1744_v1 }
  0x74   : > { %1282 = vmatpush3.bf16.msra.mxu0 %v1463_v3 }
  0x75   : > { %1283 = vmatprep.subr.bf16.mxu0 %v1744_v1 }
  0x78   : > { %1284 = vmatpush3.bf16.msra.mxu0 %v1464_v4 }
  0x79   : > { %1285 = vmatprep.subr.bf16.mxu0 %v1744_v1 }
  0x7c   : > { %1286 = vmatpush3.bf16.msra.mxu0 %v1465_v5 }
  0x7d   : > { %1287 = vmatprep.subr.bf16.mxu0 %v1744_v1 }
  0x80   : > { %1288 = vmatpush3.bf16.msra.mxu0 %v1466_v6 }
  0x81   : > { %1289 = vmatprep.subr.bf16.mxu0 %v1744_v1 }
  0x84   : > { %1290 = vmatpush3.bf16.msra.mxu0 %v1467_v7 }
  0x85   : > { %1291 = vmatprep.subr.bf16.mxu0 %v1744_v1 }
  0x88   : > { %1292 = vmatpush3.bf16.msra.mxu0 %v1468_v8 }
  0x8b   : > { %1294 = vmatmul.mubr.bf16.vlgmr.msra.gmra.mxu0 %v1469_v9 }
 0x14b   : > { %v559_v11 = vpop.f32.mrf.mxu0 }
 0x14c   : > { %v560_v12 = vadd.f32 %v1193_v10, %v559_v11 }
 0x14d   : > { %v1295_v13 = vpop.f32.mrf.mxu0 }
 0x14e   : > { %566 = vst [vmem:[#allocation2] sm:$0xff] %v560_v12 }
 0x14f   : > { %v562_v14 = vpop.f32.mrf.mxu0 }
 0x150   : > { %v563_v15 = vadd.f32 %v1193_v10, %v562_v14 }
 0x151   : > { %v1296_v16 = vpop.f32.mrf.mxu0 }
 0x152   : > { %567 = vst [vmem:[#allocation2 + $0x8] sm:$0xff] %v563_v15 }
 0x153 PF: > { %s1239_s18 = sshll.u32 %s1724_s13, 6  ;;  %v1746_v22 = vmov 0.0   ;;  %vm1747_vm1 = vmmov 0   ;;  %v601_v46 = vlaneseq  ;;  %s1203_s25 = sshll.u32 %s1724_s13, 3 }
 0x154   : > { %s616_s23 = scalar_lea.vmem [#allocation9], %s1239_s18  ;;  %1297 = vmatprep.subr.bf16.mxu0 %v1746_v22  ;;  %1317 = vmatprep.subr.bf16.mxu1 %v1746_v22  ;;  %s569_s28 = scalar_lea.vmem [#allocation8], %s1203_s25 }
 0x155   : > { %v1932_v17 = vld [vmem:[#allocation2] sm:$0xff]  ;;  %v1470_v21 = vld [vmem:[%s616_s23 + $0x38] sm:$0xff]   ;;  %v1471_v23 = vld [vmem:[%s616_s23 + $0x30] sm:$0xff]   ;;  %1313 = vmatprep.mubr.msk.bf16.mxu0 %vm1747_vm1, %v1746_v22  ;;  %1333 = vmatprep.mubr.msk.bf16.mxu1 %vm1747_vm1, %v1746_v22  ;;  %v1957_v47 = vshrl.u32 %v601_v46, 7  ;;  %s780_s30 = scalar_lea.vmem [#allocation11], %s1239_s18  ;;  %p1223_p2 = scmp.ne.s32.totalorder %s1724_s13, 1 }
 0x156   : > { %573 = vadd.xlane.f32.xlu0 %v1932_v17  ;;  %v577_v19 = vmul.f32 %v1932_v17, %v1932_v17  ;;  %1298 = vmatpush3.bf16.msra.mxu0 %v1470_v21  ;;  %v1472_v24 = vld [vmem:[%s616_s23 + $0x28] sm:$0xff]   ;;  %v1473_v25 = vld [vmem:[%s616_s23 + $0x20] sm:$0xff]   ;;  %v1474_v26 = vld [vmem:[%s616_s23 + $0x18] sm:$0xff]  }
 0x157   : > { %1299 = vmatprep.subr.bf16.mxu0 %v1746_v22  ;;  %v1475_v27 = vld [vmem:[%s616_s23 + $0x10] sm:$0xff]   ;;  %v1476_v28 = vld [vmem:[%s616_s23 + $0x8] sm:$0xff]   ;;  %v1477_v29 = vld [vmem:[%s616_s23] sm:$0xff]   ;;  %v603_v48 = vsub.s32 0, %v1957_v47  ;;  %v609_v54 = vsub.s32 1, %v1957_v47  ;;  %v635_v8 = vsub.s32 2, %v1957_v47 }
 0x158   : > { %579 = vadd.xlane.f32.xlu1 %v577_v19  ;;  %v1960_v49 = vld [vmem:[%s569_s28] sm:$0xff]  ;;  %v1478_v0 = vld [vmem:[%s780_s30 + $0x38] sm:$0xff]   ;;  %v1479_v1 = vld [vmem:[%s780_s30 + $0x30] sm:$0xff]  }
 0x159   : > { %v1934_v18 = vld [vmem:[#allocation2 + $0x8] sm:$0xff]  ;;  %v604_v53 = vrot.slane %v1960_v49, %v603_v48  ;;  %v610_v59 = vrot.slane %v1960_v49, %v609_v54  ;;  %1318 = vmatpush3.bf16.msra.mxu1 %v1478_v0  ;;  %v1481_v3 = vld [vmem:[%s780_s30 + $0x20] sm:$0xff]   ;;  %v1482_v4 = vld [vmem:[%s780_s30 + $0x18] sm:$0xff]   ;;  %v636_v9 = vrot.slane %v1960_v49, %v635_v8 }
 0x15a   : > { %v578_v20 = vmul.f32 %v1934_v18, %v1934_v18  ;;  %575 = vadd.xlane.f32.xlu0 %v1934_v18  ;;  %1300 = vmatpush3.bf16.msra.mxu0 %v1471_v23  ;;  %v1480_v2 = vld [vmem:[%s780_s30 + $0x28] sm:$0xff]   ;;  %v1483_v5 = vld [vmem:[%s780_s30 + $0x10] sm:$0xff]   ;;  %v1485_v7 = vld [vmem:[%s780_s30] sm:$0xff]  }
 0x15b   : > { %1301 = vmatprep.subr.bf16.mxu0 %v1746_v22  ;;  %1319 = vmatprep.subr.bf16.mxu1 %v1746_v22  ;;  %v1484_v6 = vld [vmem:[%s780_s30 + $0x8] sm:$0xff]  }
 0x15c   : > { %581 = vadd.xlane.f32.xlu1 %v578_v20 }
 0x15d   : > { %1320 = vmatpush3.bf16.msra.mxu1 %v1479_v1 }
 0x15e   : > { %1302 = vmatpush3.bf16.msra.mxu0 %v1472_v24  ;;  %1321 = vmatprep.subr.bf16.mxu1 %v1746_v22 }
 0x15f   : > { %1303 = vmatprep.subr.bf16.mxu0 %v1746_v22 }
 0x161   : > { %1322 = vmatpush3.bf16.msra.mxu1 %v1480_v2 }
 0x162   : > { %1304 = vmatpush3.bf16.msra.mxu0 %v1473_v25  ;;  %1323 = vmatprep.subr.bf16.mxu1 %v1746_v22 }
 0x163   : > { %1305 = vmatprep.subr.bf16.mxu0 %v1746_v22 }
 0x165   : > { %1324 = vmatpush3.bf16.msra.mxu1 %v1481_v3 }
 0x166   : > { %1306 = vmatpush3.bf16.msra.mxu0 %v1474_v26  ;;  %1325 = vmatprep.subr.bf16.mxu1 %v1746_v22 }
 0x167   : > { %1307 = vmatprep.subr.bf16.mxu0 %v1746_v22 }
 0x169   : > { %1326 = vmatpush3.bf16.msra.mxu1 %v1482_v4 }
 0x16a   : > { %1308 = vmatpush3.bf16.msra.mxu0 %v1475_v27  ;;  %1327 = vmatprep.subr.bf16.mxu1 %v1746_v22 }
 0x16b   : > { %1309 = vmatprep.subr.bf16.mxu0 %v1746_v22 }
 0x16d   : > { %1328 = vmatpush3.bf16.msra.mxu1 %v1483_v5 }
 0x16e   : > { %1310 = vmatpush3.bf16.msra.mxu0 %v1476_v28  ;;  %1329 = vmatprep.subr.bf16.mxu1 %v1746_v22 }
 0x16f   : > { %1311 = vmatprep.subr.bf16.mxu0 %v1746_v22 }
 0x171   : > { %1330 = vmatpush3.bf16.msra.mxu1 %v1484_v6 }
 0x172   : > { %1312 = vmatpush3.bf16.msra.mxu0 %v1477_v29  ;;  %1331 = vmatprep.subr.bf16.mxu1 %v1746_v22 }
 0x175   : > { %1332 = vmatpush3.bf16.msra.mxu1 %v1485_v7  ;;  %v799_v7 = vsub.s32 3, %v1957_v47 }
 0x177   : > { %v800_v8 = vrot.slane %v1960_v49, %v799_v7 }
 0x1df   : > { %v574_v30 = vpop.xlane.xlu0 %573 }
 0x1e0   : > { %v583_v31 = vmul.f32 0.03125, %v574_v30 }
 0x1e1   : > { %v580_v32 = vpop.xlane.xlu1 %579 }
 0x1e2   : > { %v587_v33 = vmul.f32 %v583_v31, %v583_v31  ;;  %v585_v34 = vmul.f32 0.03125, %v580_v32  ;;  %v593_v50 = vsub.f32 %v1932_v17, %v583_v31 }
 0x1e3   : > { %v576_v35 = vpop.xlane.xlu0 %575 }
 0x1e4   : > { %v589_v36 = vsub.f32 %v585_v34, %v587_v33  ;;  %v584_v37 = vmul.f32 0.03125, %v576_v35 }
 0x1e5   : > { %v582_v38 = vpop.xlane.xlu1 %581 }
 0x1e6   : > { %v591_v39 = vmax.f32 %v589_v36, 0.0  ;;  %v588_v40 = vmul.f32 %v584_v37, %v584_v37  ;;  %v586_v41 = vmul.f32 0.03125, %v582_v38  ;;  %v594_v55 = vsub.f32 %v1934_v18, %v584_v37 }
 0x1e8   : > { %v595_v42 = vadd.f32 1e-05, %v591_v39  ;;  %v590_v43 = vsub.f32 %v586_v41, %v588_v40 }
 0x1ea   : > { %1486 = vrsqrt.f32 %v595_v42  ;;  %v592_v44 = vmax.f32 %v590_v43, 0.0 }
 0x1ec   : > { %v596_v45 = vadd.f32 1e-05, %v592_v44 }
 0x1ee   : > { %1488 = vrsqrt.f32 %v596_v45 }
 0x1f7   : > { %v1487_v51 = vpop.eup %1486 }
 0x1f8   : > { %v599_v52 = vmul.f32 %v1487_v51, %v593_v50 }
 0x1fa   : > { %v605_v58 = vmul.f32 %v604_v53, %v599_v52 }
 0x1fb   : > { %v1489_v56 = vpop.eup %1488 }
 0x1fc   : > { %v600_v57 = vmul.f32 %v1489_v56, %v594_v55  ;;  %v611_v61 = vadd.f32 %v610_v59, %v605_v58 }
 0x1fe   : > { %v606_v60 = vmul.f32 %v604_v53, %v600_v57 }
 0x200   : > { %v612_v62 = vadd.f32 %v610_v59, %v606_v60 }
 0x202   : > { %v613_v63 = vpack.c.bf16 %v612_v62, %v611_v61 }
 0x204   : > { %1314 = vmatmul.mubr.bf16.vlgmr.msra.gmra.mxu0 %v613_v63 }
 0x2c4   : > { %v719_v10 = vpop.f32.mrf.mxu0 }
 0x2c5   : > { %v720_v11 = vadd.f32 %v719_v10, %v636_v9 }
 0x2c6   : > { %v1315_v12 = vpop.f32.mrf.mxu0 }
 0x2c7   : > { %v728_v13 = vmul.f32 0.70710677, %v720_v11  ;;  %v726_v1 = vmul.f32 0.5, %v720_v11 }
 0x2c8   : > { %v722_v14 = vpop.f32.mrf.mxu0 }
 0x2c9   : > { %v730_v15 = vand.u32 2147483647, %v728_v13  ;;  %v723_v16 = vadd.f32 %v722_v14, %v636_v9  ;;  %vm768_vm2 = vcmp.ge.f32.partialorder %v728_v13, 0.0 }
 0x2ca   : > { %v1316_v19 = vpop.f32.mrf.mxu0 }
 0x2cb   : > { %v732_v20 = vmul.f32 0.3275911, %v730_v15  ;;  %v729_v21 = vmul.f32 0.70710677, %v723_v16  ;;  %v756_v26 = vsub.f32 0.0, %v730_v15  ;;  %v727_v2 = vmul.f32 0.5, %v723_v16 }
 0x2cd   : > { %v734_v23 = vadd.f32 1.0, %v732_v20  ;;  %v731_v24 = vand.u32 2147483647, %v729_v21  ;;  %v758_v27 = vmul.f32 %v756_v26, %v730_v15  ;;  %vm769_vm3 = vcmp.ge.f32.partialorder %v729_v21, 0.0 }
 0x2cf   : > { %1490 = vrcp.f32 %v734_v23  ;;  %v733_v22 = vmul.f32 0.3275911, %v731_v24  ;;  %v757_v28 = vsub.f32 0.0, %v731_v24  ;;  %v760_v31 = vmul.f32 1.442695, %v758_v27 }
 0x2d1   : > { %v735_v25 = vadd.f32 1.0, %v733_v22  ;;  %v759_v32 = vmul.f32 %v757_v28, %v731_v24 }
 0x2d3   : > { %1492 = vrcp.f32 %v735_v25  ;;  %v762_v37 = vmul.f32 1.442695, %v759_v32 }
 0x2d4   : > { %1494 = vpow2.f32 %v760_v31 }
 0x2d5   : > { %1496 = vpow2.f32 %v762_v37 }
 0x2dc   : > { %v1491_v29 = vpop.eup %1490 }
 0x2dd   : > { %v738_v30 = vmul.f32 1.0614054, %v1491_v29 }
 0x2df   : > { %v740_v33 = vadd.f32 -1.4531521, %v738_v30 }
 0x2e0   : > { %v1493_v34 = vpop.eup %1492 }
 0x2e1   : > { %v742_v35 = vmul.f32 %v1491_v29, %v740_v33  ;;  %v739_v36 = vmul.f32 1.0614054, %v1493_v34  ;;  %v1495_v52 = vpop.eup %1494 }
 0x2e2   : > { %v1497_v57 = vpop.eup %1496 }
 0x2e3   : > { %v744_v38 = vadd.f32 1.4214138, %v742_v35  ;;  %v741_v39 = vadd.f32 -1.4531521, %v739_v36 }
 0x2e5   : > { %v746_v40 = vmul.f32 %v1491_v29, %v744_v38  ;;  %v743_v41 = vmul.f32 %v1493_v34, %v741_v39 }
 0x2e7   : > { %v748_v42 = vadd.f32 -0.28449672, %v746_v40  ;;  %v745_v43 = vadd.f32 1.4214138, %v743_v41 }
 0x2e9   : > { %v750_v44 = vmul.f32 %v1491_v29, %v748_v42  ;;  %v747_v45 = vmul.f32 %v1493_v34, %v745_v43 }
 0x2eb   : > { %v752_v46 = vadd.f32 0.2548296, %v750_v44  ;;  %v749_v48 = vadd.f32 -0.28449672, %v747_v45 }
 0x2ed   : > { %v754_v50 = vmul.f32 %v1491_v29, %v752_v46  ;;  %v751_v51 = vmul.f32 %v1493_v34, %v749_v48 }
 0x2ef   : > { %v764_v53 = vmul.f32 %v1495_v52, %v754_v50  ;;  %v753_v54 = vadd.f32 0.2548296, %v751_v51 }
 0x2f1   : > { %v766_v55 = vsub.f32 1.0, %v764_v53  ;;  %v755_v56 = vmul.f32 %v1493_v34, %v753_v54 }
 0x2f3   : > { %v770_v58 = vsub.f32 0.0, %v766_v55  ;;  %v765_v59 = vmul.f32 %v1497_v57, %v755_v56 }
 0x2f5   : > { %v772_v60 = vsel %vm768_vm2, %v766_v55, %v770_v58  ;;  %v767_v61 = vsub.f32 1.0, %v765_v59 }
 0x2f6   : > { %v774_v63 = vadd.f32 1.0, %v772_v60 }
 0x2f7   : > { %v771_v62 = vsub.f32 0.0, %v767_v61 }
 0x2f8   : > { %v776_v4 = vmul.f32 %v774_v63, %v726_v1 }
 0x2f9   : > { %v773_v0 = vsel %vm769_vm3, %v767_v61, %v771_v62 }
 0x2fa   : > { %v775_v3 = vadd.f32 1.0, %v773_v0 }
 0x2fc   : > { %v777_v5 = vmul.f32 %v775_v3, %v727_v2 }
 0x2fe   : > { %v778_v6 = vpack.c.bf16 %v777_v5, %v776_v4 }
 0x300   : > { %1334 = vmatmul.mubr.bf16.vlgmr.msra.gmra.mxu1 %v778_v6 }
 0x3c0   : > { %v883_v9 = vpop.f32.mrf.mxu1 }
 0x3c1   : > { %v884_v10 = vadd.f32 %v883_v9, %v800_v8 }
 0x3c2   : > { %v1335_v12 = vpop.f32.mrf.mxu1 }
 0x3c3   : > { %v1981_v13 = vadd.f32 %v884_v10, %v1932_v17 }
 0x3c4   : > { %v886_v14 = vpop.f32.mrf.mxu1 }
 0x3c5   : > { %892 = vst [vmem:[#allocation2] sm:$0xff] %v1981_v13  ;;  %v887_v11 = vadd.f32 %v886_v14, %v800_v8  ;;  %897 = sbr.rel (%p1223_p2) target bundleno = 1344 (0x540), region = 92 }
 0x3c6   : > { %v1336_v15 = vpop.f32.mrf.mxu1 }
 0x3c7   : > { %v891_v16 = vadd.f32 %v887_v11, %v1934_v18 }
 0x3c9   : > { %893 = vst [vmem:[#allocation2 + $0x8] sm:$0xff] %v891_v16 }
 0x3ca   : > { %900 = vadd.xlane.f32.xlu0 %v1981_v13  ;;  %v904_v47 = vmul.f32 %v1981_v13, %v1981_v13  ;;  %v905_v49 = vmul.f32 %v891_v16, %v891_v16  ;;  %v1498_v17 = vld [vmem:[#allocation12 + $0x38] sm:$0xff]   ;;  %v1748_v19 = vmov 0.0   ;;  %v1499_v20 = vld [vmem:[#allocation12 + $0x30] sm:$0xff]   ;;  %v1500_v18 = vld [vmem:[#allocation12 + $0x28] sm:$0xff]   ;;  %vm1749_vm4 = vmmov 0  }
 0x3cb   : > { %1337 = vmatprep.subr.bf16.mxu0 %v1748_v19  ;;  %v1501_v21 = vld [vmem:[#allocation12 + $0x20] sm:$0xff]   ;;  %1353 = vmatprep.mubr.msk.bf16.mxu0 %vm1749_vm4, %v1748_v19  ;;  %v1502_v23 = vld [vmem:[#allocation12 + $0x18] sm:$0xff]   ;;  %v1503_v24 = vld [vmem:[#allocation12 + $0x10] sm:$0xff]  }
 0x3cc   : > { %906 = vadd.xlane.f32.xlu1 %v904_v47  ;;  %1338 = vmatpush3.bf16.msra.mxu0 %v1498_v17  ;;  %v1504_v22 = vld [vmem:[#allocation12 + $0x8] sm:$0xff]   ;;  %v1505_v25 = vld [vmem:[#allocation12] sm:$0xff]   ;;  %v1224_v45 = vld [vmem:[%s2031_s6] ss:$0 sm:$0xff] }
 0x3cd   : > { %1339 = vmatprep.subr.bf16.mxu0 %v1748_v19  ;;  %v1225_v52 = vld [vmem:[%s2032_s7] ss:$0 sm:$0xff] }
 0x3ce   : > { %902 = vadd.xlane.f32.xlu0 %v891_v16  ;;  %v1226_v57 = vld [vmem:[%s2034_s9] ss:$0 sm:$0xff] }
 0x3d0   : > { %908 = vadd.xlane.f32.xlu1 %v905_v49  ;;  %1340 = vmatpush3.bf16.msra.mxu0 %v1499_v20 }
 0x3d1   : > { %1341 = vmatprep.subr.bf16.mxu0 %v1748_v19 }
 0x3d4   : > { %1342 = vmatpush3.bf16.msra.mxu0 %v1500_v18 }
 0x3d5   : > { %1343 = vmatprep.subr.bf16.mxu0 %v1748_v19 }
 0x3d8   : > { %1344 = vmatpush3.bf16.msra.mxu0 %v1501_v21 }
 0x3d9   : > { %1345 = vmatprep.subr.bf16.mxu0 %v1748_v19 }
 0x3dc   : > { %1346 = vmatpush3.bf16.msra.mxu0 %v1502_v23 }
 0x3dd   : > { %1347 = vmatprep.subr.bf16.mxu0 %v1748_v19 }
 0x3e0   : > { %1348 = vmatpush3.bf16.msra.mxu0 %v1503_v24 }
 0x3e1   : > { %1349 = vmatprep.subr.bf16.mxu0 %v1748_v19 }
 0x3e4   : > { %1350 = vmatpush3.bf16.msra.mxu0 %v1504_v22 }
 0x3e5   : > { %1351 = vmatprep.subr.bf16.mxu0 %v1748_v19 }
 0x3e8   : > { %1352 = vmatpush3.bf16.msra.mxu0 %v1505_v25 }
 0x453   : > { %v901_v26 = vpop.xlane.xlu0 %900 }
 0x454   : > { %v910_v27 = vmul.f32 0.03125, %v901_v26 }
 0x455   : > { %v907_v28 = vpop.xlane.xlu1 %906 }
 0x456   : > { %v914_v29 = vmul.f32 %v910_v27, %v910_v27  ;;  %v912_v30 = vmul.f32 0.03125, %v907_v28  ;;  %v920_v42 = vsub.f32 %v1981_v13, %v910_v27 }
 0x457   : > { %v903_v31 = vpop.xlane.xlu0 %902 }
 0x458   : > { %v916_v32 = vsub.f32 %v912_v30, %v914_v29  ;;  %v911_v33 = vmul.f32 0.03125, %v903_v31 }
 0x459   : > { %v909_v34 = vpop.xlane.xlu1 %908 }
 0x45a   : > { %v918_v35 = vmax.f32 %v916_v32, 0.0  ;;  %v915_v36 = vmul.f32 %v911_v33, %v911_v33  ;;  %v913_v37 = vmul.f32 0.03125, %v909_v34  ;;  %v921_v46 = vsub.f32 %v891_v16, %v911_v33 }
 0x45c   : > { %v922_v38 = vadd.f32 1e-05, %v918_v35  ;;  %v917_v39 = vsub.f32 %v913_v37, %v915_v36 }
 0x45e   : > { %1506 = vrsqrt.f32 %v922_v38  ;;  %v919_v40 = vmax.f32 %v917_v39, 0.0 }
 0x460   : > { %v923_v41 = vadd.f32 1e-05, %v919_v40 }
 0x462   : > { %1508 = vrsqrt.f32 %v923_v41 }
 0x46b   : > { %v1507_v43 = vpop.eup %1506 }
 0x46c   : > { %v926_v44 = vmul.f32 %v1507_v43, %v920_v42 }
 0x46e   : > { %v934_v51 = vmul.f32 %v1224_v45, %v926_v44 }
 0x46f   : > { %v1509_v48 = vpop.eup %1508 }
 0x470   : > { %v927_v50 = vmul.f32 %v1509_v48, %v921_v46  ;;  %v942_v54 = vadd.f32 %v1225_v52, %v934_v51 }
 0x472   : > { %v935_v53 = vmul.f32 %v1224_v45, %v927_v50 }
 0x474   : > { %v943_v55 = vadd.f32 %v1225_v52, %v935_v53 }
 0x476   : > { %v944_v56 = vpack.c.bf16 %v943_v55, %v942_v54 }
 0x478   : > { %1354 = vmatmul.mubr.bf16.vlgmr.msra.gmra.mxu0 %v944_v56 }
 0x538   : > { %v1050_v58 = vpop.f32.mrf.mxu0 }
 0x539   : > { %v1051_v59 = vadd.f32 %v1226_v57, %v1050_v58 }
 0x53a   : > { %v1355_v60 = vpop.f32.mrf.mxu0 }
 0x53b   : > { %1057 = vst [vmem:[#allocation14] sm:$0xff] %v1051_v59 }
 0x53c   : > { %v1053_v61 = vpop.f32.mrf.mxu0 }
 0x53d   : > { %v1054_v62 = vadd.f32 %v1226_v57, %v1053_v61 }
 0x53e   : > { %v1356_v63 = vpop.f32.mrf.mxu0 }
 0x53f   : > { %1058 = vst [vmem:[#allocation14 + $0x8] sm:$0xff] %v1054_v62 }
 0x540 PF: > { %s2044_s19 = sadd.s32 4294967295, %s1732_s15   ;;  %s1750_s27 = smov [#allocation14]  }
 0x541   : > { %p2001_p5 = scmp.eq.s32.totalorder %s2044_s19, 1  ;;  %s1068_s26 = sshll.u32 %s1750_s27, 4  ;;  %s1069_s26 = int_to_ptr.vmem [resolvable:$true] %s1068_s26 }
 0x542   : > { %s1666_s16 = scalar_lea.vmem %s1069_s26, 256  ;;  %p1673_p12 = scmp.lt.s32.totalorder %s1069_s26, %s1069_s26 }
 0x543   : > { %p1667_p6 = scmp.ne.s32.totalorder %s1069_s26, %s1666_s16  ;;  %p1674_p13 = scmp.lt.s32.totalorder %s1666_s16, %s1666_s16 }
 0x545   : > { %p1668_p10 = pnand %p1667_p6, %p2001_p5  ;;  %p1675_p0 = por %p1674_p13, %p1673_p12 }
 0x547   : > { %p1669_p11 = pneg %p1668_p10 }
 0x549   : > { %p1676_p1 = pnand %p1675_p0, %p1669_p11 }
 0x54b   : > { %1679 = shalt.err (!%p1676_p1)
}
 0x54c   : > { %s1751_s17 = smov 128   ;;  %s1752_s18 = smov 8  }
 0x54d   : > { %1382 = dma.vmem_to_hbm [thread:$0]  (%p2001_p5), %s1069_s26, 256, %s2035_s10, [#allocation5], %s1751_s17, %s1751_s17, %s1752_s18  }
 0x54e   : > { %1719 = dma.done.wait (%p2001_p5), [#allocation5], 256  }
 0x54f   : > { %1721 = vsyncadd (%p2001_p5), [#allocation5], 4294967040 }
 0x550 PF: > { %s25_s15 = sadd.s32 1, %s1732_s15   ;;  %s2046_s13 = smov %s1728_s14 }
 0x551   : > { %p22_p4 = scmp.ge.s32.totalorder %s25_s15, 4   ;;  %s2047_s14 = smov %s2049_s24 }
 0x553   :  { %24 = sbr.rel (!%p22_p4) target bundleno = 6 (0x6), region = 122 }
 0x558   :  { %1084 = vsyncpa [#allocation4], 1 }
 0x559   :  { %1086 = vsyncpa [#allocation4 + $0x1], 1 }
 0x55a   :  { %1087 = vsyncpa [#allocation7], 1 }
 0x55b   :  { %1088 = vsyncpa [#allocation10], 1 }
 0x55c   :  { %1089 = vsyncpa [#allocation13], 1 }
 0x55d   :  { %1090 = vsyncpa [#allocation5], 1 }
 0x55e   :  { %1092 = vsyncpa [#allocation5 + $0x1], 1 }

</bundles_post_ra>
